<compile_context>
chip_gen: v6e
topology: v6e:2x2x1
jax: 0.10.0
libtpu: 0.0.40
codegen_flags: <defaults>
</compile_context>

<pallas_src>
import functools

import jax
import jax.numpy as jnp
from jax import lax
from jax.experimental import pallas as pl
from jax.experimental.pallas import tpu as pltpu

_LANE = 128
_SUBLANE = 8


def _round_up(x, m):
    return (x + m - 1) // m * m


def _pick_tb(B):
    """Batch-tile size: single sublane-padded tile for small B; otherwise
    ~B/4 (>= 2 grid steps per v7x TensorCore), clamped to [256, 1024]."""
    if B <= 256:
        return _round_up(max(B, 1), _SUBLANE)
    tb = _round_up(-(-B // 4), _SUBLANE)
    return max(256, min(1024, tb))


def fcdap_fused_kernel(x_ref, w1_ref, b1_ref, w2_ref, b2_ref, w3_ref, b3_ref,
                       o_ref, xpad_ref, *, in_dim, out_dim):
    mm_dtype = w1_ref.dtype

    # Lane-pad the streamed (tb, in_dim) tile to (tb, in_p) inside VMEM.
    if in_dim == xpad_ref.shape[1]:
        x = x_ref[...].astype(mm_dtype)
    else:
        xpad_ref[...] = jnp.zeros_like(xpad_ref)
        xpad_ref[:, :in_dim] = x_ref[...].astype(xpad_ref.dtype)
        x = xpad_ref[...].astype(mm_dtype)

    # 3-layer MLP: Linear+ReLU, Linear+ReLU, Linear (f32 accumulation).
    h = jnp.dot(x, w1_ref[...], preferred_element_type=jnp.float32) + b1_ref[...]
    h = jnp.maximum(h, 0.0).astype(mm_dtype)
    h = jnp.dot(h, w2_ref[...], preferred_element_type=jnp.float32) + b2_ref[...]
    h = jnp.maximum(h, 0.0).astype(mm_dtype)
    logits = jnp.dot(h, w3_ref[...], preferred_element_type=jnp.float32) + b3_ref[...]
    # Padded weight/bias columns are zero, so padded logit lanes are exactly 0.

    tb, out_p = logits.shape
    lane = lax.broadcasted_iota(jnp.int32, (tb, out_p), 1)
    valid = lane < out_dim

    # Fused softmax statistics over the real out_dim lanes only.
    masked = jnp.where(valid, logits, -jnp.inf)
    m = jnp.max(masked, axis=-1, keepdims=True)
    e = jnp.where(valid, jnp.exp(logits - m), 0.0)
    z = jnp.sum(e, axis=-1, keepdims=True)
    log_z = jnp.log(z)
    logp = logits - m - log_z                      # valid only on real lanes
    probs = e * pl.reciprocal(z)
    entropy = -jnp.sum(jnp.where(valid, probs * logp, 0.0),
                       axis=-1, keepdims=True)

    # Greedy action = first index attaining the max (matches np.argmax).
    lane_f = lane.astype(jnp.float32)
    is_max = valid & (masked == m)
    greedy = jnp.min(jnp.where(is_max, lane_f, jnp.float32(out_p)),
                     axis=-1, keepdims=True)

    # Pack [logits | log-probs | entropy | greedy | 0...] into one 128-lane
    # row and store it with a single full-width (unmasked) vst.
    logp_sh = pltpu.roll(jnp.where(valid, logp, 0.0), shift=out_dim, axis=1)
    packed = jnp.where(valid, logits, 0.0)
    packed = jnp.where((lane >= out_dim) & (lane < 2 * out_dim), logp_sh, packed)
    packed = jnp.where(lane == 2 * out_dim, entropy, packed)
    packed = jnp.where(lane == 2 * out_dim + 1, greedy, packed)
    o_ref[...] = packed.astype(o_ref.dtype)


def prepare_fcdap_params(w1, b1, w2, b2, w3, b3, *, dtype=jnp.bfloat16):
    """One-time lane-padding + cast of the parameters (call once, reuse every
    step).  Weights stored (in, out); biases (1, out); padding is zeros."""
    in_dim, h1 = w1.shape
    h2 = w2.shape[1]
    out_dim = w3.shape[1]
    in_p = _round_up(in_dim, _LANE)
    h1_p = _round_up(h1, _LANE)
    h2_p = _round_up(h2, _LANE)
    out_p = _round_up(max(out_dim, 2 * out_dim + 2), _LANE)

    def pad2(a, rows, cols, dt):
        a = a.reshape(-1, a.shape[-1]) if a.ndim == 2 else a.reshape(1, -1)
        return jnp.pad(a, ((0, rows - a.shape[0]), (0, cols - a.shape[1]))).astype(dt)

    return (pad2(w1, in_p, h1_p, dtype), pad2(b1, 1, h1_p, jnp.float32),
            pad2(w2, h1_p, h2_p, dtype), pad2(b2, 1, h2_p, jnp.float32),
            pad2(w3, h2_p, out_p, dtype), pad2(b3, 1, out_p, jnp.float32))


@functools.partial(jax.jit, static_argnames=("out_dim",))
def fcdap_fused(x, params, *, out_dim):
    """Fused forward: returns (logits, log_probs, entropy, greedy) with
    shapes (B, out_dim), (B, out_dim), (B, 1), (B,)."""
    if x.ndim == 1:
        x = x[None, :]
    w1p, b1p, w2p, b2p, w3p, b3p = params
    B, in_dim = x.shape
    in_p = w1p.shape[0]
    out_p = w3p.shape[1]
    assert 2 * out_dim + 2 <= out_p

    if B == 0:  # empty-batch guard
        z2 = jnp.zeros((0, out_dim), jnp.float32)
        return z2, z2, jnp.zeros((0, 1), jnp.float32), jnp.zeros((0,), jnp.int32)

    tb = _pick_tb(B)
    grid = (pl.cdiv(B, tb),)

    kernel = functools.partial(fcdap_fused_kernel, in_dim=in_dim, out_dim=out_dim)
    const = lambda shape: pl.BlockSpec(shape, lambda i: (0, 0))

    packed = pl.pallas_call(
        kernel,
        out_shape=jax.ShapeDtypeStruct((B, out_p), jnp.float32),
        grid=grid,
        in_specs=[
            pl.BlockSpec((tb, in_dim), lambda i: (i, 0)),   # x streamed, unpadded
            const(w1p.shape), const(b1p.shape),             # weights stay resident
            const(w2p.shape), const(b2p.shape),
            const(w3p.shape), const(b3p.shape),
        ],
        out_specs=pl.BlockSpec((tb, out_p), lambda i: (i, 0)),
        scratch_shapes=[pltpu.VMEM((tb, in_p), jnp.float32)],
        compiler_params=pltpu.CompilerParams(
            dimension_semantics=("parallel",),
        ),
    )(x, w1p, b1p, w2p, b2p, w3p, b3p)

    logits = packed[:, :out_dim]
    log_probs = packed[:, out_dim:2 * out_dim]
    entropy = packed[:, 2 * out_dim:2 * out_dim + 1]
    greedy = packed[:, 2 * out_dim + 1].astype(jnp.int32)
    return logits, log_probs, entropy, greedy


@functools.partial(jax.jit, static_argnames=("out_dim",))
def _fcdap_logits_xla(x, params, *, out_dim):
    """Plain fused-XLA path for tiny batches (Pallas launch overhead dominates)."""
    w1p, b1p, w2p, b2p, w3p, b3p = params
    in_dim = x.shape[1]
    f32 = jnp.float32
    h = jax.nn.relu(jnp.dot(x.astype(f32), w1p[:in_dim].astype(f32)) + b1p)
    h = jax.nn.relu(jnp.dot(h, w2p.astype(f32)) + b2p)
    return (jnp.dot(h, w3p.astype(f32)) + b3p)[:, :out_dim]


def fcdap_forward(x, params, *, out_dim, min_pallas_batch=64):
    """Module `forward`: returns logits.  Tiny batches bypass the kernel."""
    if x.ndim == 1:
        x = x[None, :]
    if x.shape[0] <= min_pallas_batch:
        return _fcdap_logits_xla(x, params, out_dim=out_dim)
    return fcdap_fused(x, params, out_dim=out_dim)[0]


# TODO(synk): Categorical sampling in full_pass/select_action is a stochastic
# host/JAX-level draw (jax.random.categorical on the fused logits); entropy,
# log-probs and the greedy action are already produced by the kernel.


def init_linear_params(key, fan_in, fan_out):
    """Deterministic init matching PyTorch nn.Linear default:
    U(-1/sqrt(fan_in), 1/sqrt(fan_in)) for both weight and bias."""
    kw, kb = jax.random.split(key)
    bound = 1.0 / jnp.sqrt(jnp.float32(fan_in))
    w = jax.random.uniform(kw, (fan_in, fan_out), jnp.float32, -bound, bound)
    b = jax.random.uniform(kb, (1, fan_out), jnp.float32, -bound, bound)
    return w, b


def fcdap_reference_full(x, w1, b1, w2, b2, w3, b3):
    hp = jax.lax.Precision.HIGHEST
    h = jax.nn.relu(jnp.dot(x, w1, precision=hp) + b1)
    h = jax.nn.relu(jnp.dot(h, w2, precision=hp) + b2)
    logits = jnp.dot(h, w3, precision=hp) + b3
    logp = jax.nn.log_softmax(logits, axis=-1)
    probs = jax.nn.softmax(logits, axis=-1)
    entropy = -jnp.sum(probs * logp, axis=-1, keepdims=True)
    greedy = jnp.argmax(logits, axis=-1)
    return logits, logp, entropy, greedy


def _check(name, got, ref, atol, rtol):
    assert got.shape == ref.shape, (name, got.shape, ref.shape)
    assert jnp.allclose(got, ref, atol=atol, rtol=rtol), name


def _check_greedy(greedy, ref_logits, gap_tol):
    ref_greedy = jnp.argmax(ref_logits, axis=-1)
    s = jnp.sort(ref_logits, axis=-1)
    gap = s[:, -1] - s[:, -2]
    ok = (greedy == ref_greedy) | (gap < gap_tol)   # ignore numerical near-ties
    assert bool(jnp.all(ok)), "greedy action mismatch"


if __name__ == "__main__":
    # CartPole-like policy net: batch=2, input_dim=4, hidden=(32, 32), out=2.
    batch, input_dim, output_dim = 2, 4, 2
    hidden_dims = (32, 32)

    key = jax.random.PRNGKey(0)
    k_x, k1, k2, k3, k_big = jax.random.split(key, 5)

    x = jax.random.normal(k_x, (batch, input_dim), jnp.float32)
    w1, b1 = init_linear_params(k1, input_dim, hidden_dims[0])
    w2, b2 = init_linear_params(k2, hidden_dims[0], hidden_dims[1])
    w3, b3 = init_linear_params(k3, hidden_dims[1], output_dim)

    # One-time padded/cast parameters (hoisted out of the per-step call).
    params_f32 = prepare_fcdap_params(w1, b1, w2, b2, w3, b3, dtype=jnp.float32)
    params_bf16 = prepare_fcdap_params(w1, b1, w2, b2, w3, b3)   # bf16 default

    # ---- small batch, forced through the fused Pallas kernel ----
    out = fcdap_fused(x, params_f32, out_dim=output_dim)
    logits, logp, ent, greedy = [jax.block_until_ready(t) for t in out]
    r_logits, r_logp, r_ent, _ = fcdap_reference_full(x, w1, b1, w2, b2, w3, b3)
    assert logits.shape == (batch, output_dim)
    _check("logits", logits, r_logits, 2e-3, 2e-3)
    _check("log_probs", logp, r_logp, 2e-3, 2e-3)
    _check("entropy", ent, r_ent, 2e-3, 2e-3)
    _check_greedy(greedy, r_logits, 1e-2)

    # ---- large batch: ragged 1-D grid, resident weights, fused epilogue ----
    xb = jax.random.normal(k_big, (1000, input_dim), jnp.float32)
    outb = fcdap_fused(xb, params_f32, out_dim=output_dim)
    logits_b, logp_b, ent_b, greedy_b = [jax.block_until_ready(t) for t in outb]
    rb_logits, rb_logp, rb_ent, _ = fcdap_reference_full(xb, w1, b1, w2, b2, w3, b3)
    assert logits_b.shape == (1000, output_dim)
    _check("logits_big", logits_b, rb_logits, 2e-3, 2e-3)
    _check("log_probs_big", logp_b, rb_logp, 2e-3, 2e-3)
    _check("entropy_big", ent_b, rb_ent, 2e-3, 2e-3)
    _check_greedy(greedy_b, rb_logits, 1e-2)

    # ---- bf16 weight path (v6e/v7x throughput default) ----
    outw = fcdap_fused(xb, params_bf16, out_dim=output_dim)
    logits_w = jax.block_until_ready(outw[0])
    _check("logits_bf16", logits_w, rb_logits, 5e-2, 5e-2)

    # ---- forward() dispatcher: tiny batch bypasses Pallas, big batch uses it ----
    lg_small = jax.block_until_ready(fcdap_forward(x, params_bf16, out_dim=output_dim))
    assert lg_small.shape == (batch, output_dim)
    lg_big = jax.block_until_ready(fcdap_forward(xb, params_bf16, out_dim=output_dim))
    assert lg_big.shape == (1000, output_dim)

    print("KERNEL_OK")
</pallas_src>

<mosaic_0001>
module attributes {stable_mosaic.version = 11 : i64} {
  func.func @fcdap_fused_kernel(%arg0: i32, %arg1: memref<8x4xf32, #tpu.memory_space<vmem>>, %arg2: memref<128x128xf32, #tpu.memory_space<vmem>>, %arg3: memref<1x128xf32, #tpu.memory_space<vmem>>, %arg4: memref<128x128xf32, #tpu.memory_space<vmem>>, %arg5: memref<1x128xf32, #tpu.memory_space<vmem>>, %arg6: memref<128x128xf32, #tpu.memory_space<vmem>>, %arg7: memref<1x128xf32, #tpu.memory_space<vmem>>, %arg8: memref<8x128xf32, #tpu.memory_space<vmem>>, %arg9: memref<8x128xf32, #tpu.memory_space<vmem>>) attributes {dimension_semantics = [#tpu.dimension_semantics<parallel>], iteration_bounds = array<i64: 1>, scalar_prefetch = 0 : i64, scratch_operands = 1 : i64, tpu.core_type = #tpu.core_type<tc>, window_params = [{transform_indices = @transform_0, window_bounds = array<i64: 8, 4>}, {pipeline_mode = #tpu.pipeline_mode<synchronous>, transform_indices = @transform_1, window_bounds = array<i64: 128, 128>}, {pipeline_mode = #tpu.pipeline_mode<synchronous>, transform_indices = @transform_2, window_bounds = array<i64: 1, 128>}, {pipeline_mode = #tpu.pipeline_mode<synchronous>, transform_indices = @transform_3, window_bounds = array<i64: 128, 128>}, {pipeline_mode = #tpu.pipeline_mode<synchronous>, transform_indices = @transform_4, window_bounds = array<i64: 1, 128>}, {pipeline_mode = #tpu.pipeline_mode<synchronous>, transform_indices = @transform_5, window_bounds = array<i64: 128, 128>}, {pipeline_mode = #tpu.pipeline_mode<synchronous>, transform_indices = @transform_6, window_bounds = array<i64: 1, 128>}, {transform_indices = @transform_7, window_bounds = array<i64: 8, 128>}]} {
    %cst = arith.constant 0.000000e+00 : f32
    %0 = vector.broadcast %cst : f32 to vector<8x128xf32>
    %c0 = arith.constant 0 : index
    %c0_0 = arith.constant 0 : index
    %1 = vector.load %arg9[%c0, %c0_0] : memref<8x128xf32, #tpu.memory_space<vmem>>, vector<8x128xf32>
    tpu.vector_store %arg9[%c0, %c0_0], %0 {strides = array<i32>} : memref<8x128xf32, #tpu.memory_space<vmem>>, vector<8x128xf32>,
    %c0_1 = arith.constant 0 : index
    %c0_2 = arith.constant 0 : index
    %2 = vector.load %arg1[%c0_1, %c0_2] : memref<8x4xf32, #tpu.memory_space<vmem>>, vector<8x4xf32>
    %c0_3 = arith.constant 0 : index
    %c0_4 = arith.constant 0 : index
    %3 = vector.load %arg9[%c0_3, %c0_4] : memref<8x128xf32, #tpu.memory_space<vmem>>, vector<8x4xf32>
    tpu.vector_store %arg9[%c0_3, %c0_4], %2 {strides = array<i32>} : memref<8x128xf32, #tpu.memory_space<vmem>>, vector<8x4xf32>,
    %c0_5 = arith.constant 0 : index
    %c0_6 = arith.constant 0 : index
    %4 = vector.load %arg9[%c0_5, %c0_6] : memref<8x128xf32, #tpu.memory_space<vmem>>, vector<8x128xf32>
    %c0_7 = arith.constant 0 : index
    %c0_8 = arith.constant 0 : index
    %5 = vector.load %arg2[%c0_7, %c0_8] : memref<128x128xf32, #tpu.memory_space<vmem>>, vector<128x128xf32>
    %cst_9 = arith.constant dense<0.000000e+00> : vector<8x128xf32>
    %6 = tpu.matmul %4, %5, %cst_9 {dimension_numbers = #tpu.dot_dimension_numbers<[1], [0], [0], [1], [0, 0, 1, 1], [], []>} : vector<8x128xf32>, vector<128x128xf32>, vector<8x128xf32> -> vector<8x128xf32>
    %c0_10 = arith.constant 0 : index
    %c0_11 = arith.constant 0 : index
    %7 = vector.load %arg3[%c0_10, %c0_11] : memref<1x128xf32, #tpu.memory_space<vmem>>, vector<1x128xf32>
    %8 = vector.broadcast %7 : vector<1x128xf32> to vector<8x128xf32>
    %9 = arith.addf %6, %8 : vector<8x128xf32>
    %cst_12 = arith.constant 0.000000e+00 : f32
    %10 = vector.broadcast %cst_12 : f32 to vector<8x128xf32>
    %11 = arith.maximumf %9, %10 : vector<8x128xf32>
    %c0_13 = arith.constant 0 : index
    %c0_14 = arith.constant 0 : index
    %12 = vector.load %arg4[%c0_13, %c0_14] : memref<128x128xf32, #tpu.memory_space<vmem>>, vector<128x128xf32>
    %cst_15 = arith.constant dense<0.000000e+00> : vector<8x128xf32>
    %13 = tpu.matmul %11, %12, %cst_15 {dimension_numbers = #tpu.dot_dimension_numbers<[1], [0], [0], [1], [0, 0, 1, 1], [], []>} : vector<8x128xf32>, vector<128x128xf32>, vector<8x128xf32> -> vector<8x128xf32>
    %c0_16 = arith.constant 0 : index
    %c0_17 = arith.constant 0 : index
    %14 = vector.load %arg5[%c0_16, %c0_17] : memref<1x128xf32, #tpu.memory_space<vmem>>, vector<1x128xf32>
    %15 = vector.broadcast %14 : vector<1x128xf32> to vector<8x128xf32>
    %16 = arith.addf %13, %15 : vector<8x128xf32>
    %cst_18 = arith.constant 0.000000e+00 : f32
    %17 = vector.broadcast %cst_18 : f32 to vector<8x128xf32>
    %18 = arith.maximumf %16, %17 : vector<8x128xf32>
    %c0_19 = arith.constant 0 : index
    %c0_20 = arith.constant 0 : index
    %19 = vector.load %arg6[%c0_19, %c0_20] : memref<128x128xf32, #tpu.memory_space<vmem>>, vector<128x128xf32>
    %cst_21 = arith.constant dense<0.000000e+00> : vector<8x128xf32>
    %20 = tpu.matmul %18, %19, %cst_21 {dimension_numbers = #tpu.dot_dimension_numbers<[1], [0], [0], [1], [0, 0, 1, 1], [], []>} : vector<8x128xf32>, vector<128x128xf32>, vector<8x128xf32> -> vector<8x128xf32>
    %c0_22 = arith.constant 0 : index
    %c0_23 = arith.constant 0 : index
    %21 = vector.load %arg7[%c0_22, %c0_23] : memref<1x128xf32, #tpu.memory_space<vmem>>, vector<1x128xf32>
    %22 = vector.broadcast %21 : vector<1x128xf32> to vector<8x128xf32>
    %23 = arith.addf %20, %22 : vector<8x128xf32>
    %24 = tpu.iota {dimensions = array<i32: 1>} : vector<8x128xi32>
    %c2_i32 = arith.constant 2 : i32
    %25 = vector.broadcast %c2_i32 : i32 to vector<8x128xi32>
    %26 = arith.cmpi slt, %24, %25 : vector<8x128xi32>
    %cst_24 = arith.constant 0xFF800000 : f32
    %27 = vector.broadcast %cst_24 : f32 to vector<8x128xf32>
    %28 = arith.select %26, %23, %27 : vector<8x128xi1>, vector<8x128xf32>
    %cst_25 = arith.constant dense<0xFF800000> : vector<8xf32>
    %29 = vector.multi_reduction <maximumf>, %28, %cst_25 [1] : vector<8x128xf32> to vector<8xf32>
    %30 = vector.shape_cast %29 : vector<8xf32> to vector<8x1xf32>
    %31 = vector.broadcast %30 : vector<8x1xf32> to vector<8x128xf32>
    %32 = arith.subf %23, %31 : vector<8x128xf32>
    %33 = math.exp %32 : vector<8x128xf32>
    %cst_26 = arith.constant 0.000000e+00 : f32
    %34 = vector.broadcast %cst_26 : f32 to vector<8x128xf32>
    %35 = arith.select %26, %33, %34 : vector<8x128xi1>, vector<8x128xf32>
    %cst_27 = arith.constant dense<0.000000e+00> : vector<8xf32>
    %36 = vector.multi_reduction <add>, %35, %cst_27 [1] : vector<8x128xf32> to vector<8xf32>
    %37 = vector.shape_cast %36 : vector<8xf32> to vector<8x1xf32>
    %38 = math.log %37 : vector<8x1xf32>
    %39 = vector.broadcast %30 : vector<8x1xf32> to vector<8x128xf32>
    %40 = arith.subf %23, %39 : vector<8x128xf32>
    %41 = vector.broadcast %38 : vector<8x1xf32> to vector<8x128xf32>
    %42 = arith.subf %40, %41 : vector<8x128xf32>
    %43 = tpu.reciprocal %37 : vector<8x1xf32> -> vector<8x1xf32>
    %44 = vector.broadcast %43 : vector<8x1xf32> to vector<8x128xf32>
    %45 = arith.mulf %35, %44 : vector<8x128xf32>
    %46 = arith.mulf %45, %42 : vector<8x128xf32>
    %cst_28 = arith.constant 0.000000e+00 : f32
    %47 = vector.broadcast %cst_28 : f32 to vector<8x128xf32>
    %48 = arith.select %26, %46, %47 : vector<8x128xi1>, vector<8x128xf32>
    %cst_29 = arith.constant dense<0.000000e+00> : vector<8xf32>
    %49 = vector.multi_reduction <add>, %48, %cst_29 [1] : vector<8x128xf32> to vector<8xf32>
    %50 = vector.shape_cast %49 : vector<8xf32> to vector<8x1xf32>
    %cst_30 = arith.constant 0.000000e+00 : f32
    %51 = vector.broadcast %cst_30 : f32 to vector<8x1xf32>
    %52 = arith.subf %51, %50 : vector<8x1xf32>
    %53 = arith.sitofp %24 : vector<8x128xi32> to vector<8x128xf32>
    %54 = vector.broadcast %30 : vector<8x1xf32> to vector<8x128xf32>
    %55 = arith.cmpf oeq, %28, %54 : vector<8x128xf32>
    %56 = arith.andi %26, %55 : vector<8x128xi1>
    %cst_31 = arith.constant 1.280000e+02 : f32
    %57 = vector.broadcast %cst_31 : f32 to vector<8x128xf32>
    %58 = arith.select %56, %53, %57 : vector<8x128xi1>, vector<8x128xf32>
    %cst_32 = arith.constant dense<0x7F800000> : vector<8xf32>
    %59 = vector.multi_reduction <minimumf>, %58, %cst_32 [1] : vector<8x128xf32> to vector<8xf32>
    %60 = vector.shape_cast %59 : vector<8xf32> to vector<8x1xf32>
    %cst_33 = arith.constant 0.000000e+00 : f32
    %61 = vector.broadcast %cst_33 : f32 to vector<8x128xf32>
    %62 = arith.select %26, %42, %61 : vector<8x128xi1>, vector<8x128xf32>
    %c2_i32_34 = arith.constant 2 : i32
    %63 = tpu.dynamic_rotate %62 by %c2_i32_34 dim 1 : vector<8x128xf32>, i32 -> vector<8x128xf32>
    %cst_35 = arith.constant 0.000000e+00 : f32
    %64 = vector.broadcast %cst_35 : f32 to vector<8x128xf32>
    %65 = arith.select %26, %23, %64 : vector<8x128xi1>, vector<8x128xf32>
    %c2_i32_36 = arith.constant 2 : i32
    %66 = vector.broadcast %c2_i32_36 : i32 to vector<8x128xi32>
    %67 = arith.cmpi sge, %24, %66 : vector<8x128xi32>
    %c4_i32 = arith.constant 4 : i32
    %68 = vector.broadcast %c4_i32 : i32 to vector<8x128xi32>
    %69 = arith.cmpi slt, %24, %68 : vector<8x128xi32>
    %70 = arith.andi %67, %69 : vector<8x128xi1>
    %71 = arith.select %70, %63, %65 : vector<8x128xi1>, vector<8x128xf32>
    %c4_i32_37 = arith.constant 4 : i32
    %72 = vector.broadcast %c4_i32_37 : i32 to vector<8x128xi32>
    %73 = arith.cmpi eq, %24, %72 : vector<8x128xi32>
    %74 = vector.shape_cast %52 : vector<8x1xf32> to vector<8x1xf32>
    %75 = vector.broadcast %74 : vector<8x1xf32> to vector<8x128xf32>
    %76 = arith.select %73, %75, %71 : vector<8x128xi1>, vector<8x128xf32>
    %c5_i32 = arith.constant 5 : i32
    %77 = vector.broadcast %c5_i32 : i32 to vector<8x128xi32>
    %78 = arith.cmpi eq, %24, %77 : vector<8x128xi32>
    %79 = vector.shape_cast %60 : vector<8x1xf32> to vector<8x1xf32>
    %80 = vector.broadcast %79 : vector<8x1xf32> to vector<8x128xf32>
    %81 = arith.select %78, %80, %76 : vector<8x128xi1>, vector<8x128xf32>
    %c0_38 = arith.constant 0 : index
    %c0_39 = arith.constant 0 : index
    %82 = vector.load %arg8[%c0_38, %c0_39] : memref<8x128xf32, #tpu.memory_space<vmem>>, vector<8x128xf32>
    tpu.vector_store %arg8[%c0_38, %c0_39], %81 {strides = array<i32>} : memref<8x128xf32, #tpu.memory_space<vmem>>, vector<8x128xf32>,
    return
  }
  func.func @transform_0(%arg0: i32) -> (i32, i32) {
    %c0_i32 = arith.constant 0 : i32
    %c0_i32_0 = arith.constant 0 : i32
    return %arg0, %c0_i32 : i32, i32
  }
  func.func @transform_1(%arg0: i32) -> (i32, i32) {
    %c0_i32 = arith.constant 0 : i32
    %c0_i32_0 = arith.constant 0 : i32
    %c0_i32_1 = arith.constant 0 : i32
    return %c0_i32, %c0_i32_0 : i32, i32
  }
  func.func @transform_2(%arg0: i32) -> (i32, i32) {
    %c0_i32 = arith.constant 0 : i32
    %c0_i32_0 = arith.constant 0 : i32
    %c0_i32_1 = arith.constant 0 : i32
    return %c0_i32, %c0_i32_0 : i32, i32
  }
  func.func @transform_3(%arg0: i32) -> (i32, i32) {
    %c0_i32 = arith.constant 0 : i32
    %c0_i32_0 = arith.constant 0 : i32
    %c0_i32_1 = arith.constant 0 : i32
    return %c0_i32, %c0_i32_0 : i32, i32
  }
  func.func @transform_4(%arg0: i32) -> (i32, i32) {
    %c0_i32 = arith.constant 0 : i32
    %c0_i32_0 = arith.constant 0 : i32
    %c0_i32_1 = arith.constant 0 : i32
    return %c0_i32, %c0_i32_0 : i32, i32
  }
  func.func @transform_5(%arg0: i32) -> (i32, i32) {
    %c0_i32 = arith.constant 0 : i32
    %c0_i32_0 = arith.constant 0 : i32
    %c0_i32_1 = arith.constant 0 : i32
    return %c0_i32, %c0_i32_0 : i32, i32
  }
  func.func @transform_6(%arg0: i32) -> (i32, i32) {
    %c0_i32 = arith.constant 0 : i32
    %c0_i32_0 = arith.constant 0 : i32
    %c0_i32_1 = arith.constant 0 : i32
    return %c0_i32, %c0_i32_0 : i32, i32
  }
  func.func @transform_7(%arg0: i32) -> (i32, i32) {
    %c0_i32 = arith.constant 0 : i32
    %c0_i32_0 = arith.constant 0 : i32
    return %arg0, %c0_i32 : i32, i32
  }
}

</mosaic_0001>

<bundles_post_ra>
// kernel: fcdap_fused.1
= control target key start
LH: loop header
LB: loop body
LE: loop exit
PB: predicated region body
PF: predicated region fallthrough
CT: control target
= control target key end

     0   :  { %12 = vsyncpa [#allocation4], 0  ;;  %s859_s0 = inlined_call_operand.hbm [shape: f32[2,4], index: 0, kind: input, shape index: {}]   ;;  %s860_s1 = inlined_call_operand.hbm [shape: f32[128,128], index: 1, kind: input, shape index: {}]   ;;  %s861_s2 = inlined_call_operand.vmem [shape: f32[1,128], index: 2, kind: input, shape index: {}]   ;;  %s862_s3 = inlined_call_operand.hbm [shape: f32[128,128], index: 3, kind: input, shape index: {}]   ;;  %s863_s4 = inlined_call_operand.vmem [shape: f32[1,128], index: 4, kind: input, shape index: {}]   ;;  %s864_s5 = inlined_call_operand.hbm [shape: f32[128,128], index: 5, kind: input, shape index: {}]   ;;  %s865_s6 = inlined_call_operand.vmem [shape: f32[1,128], index: 6, kind: input, shape index: {}]   ;;  %s866_s7 = inlined_call_operand.vmem [shape: f32[2,128], index: 7, kind: output, shape index: {}]  }
   0x1   :  { %13 = vsyncpa [#allocation6], 0 }
   0x2   :  { %14 = vsyncpa [#allocation9], 0 }
   0x3   :  { %19 = vsyncadd [#allocation4], 96  ;;  %s713_s24 = smov [#allocation5]  }
   0x4   :  { %s32_s25 = sshll.u32 %s713_s24, 4  ;;  %s33_s25 = int_to_ptr.vmem [resolvable:$true] %s32_s25 }
   0x5   :  { %s635_s26 = scalar_lea.vmem %s33_s25, 2048  ;;  %p640_p1 = scmp.lt.s32.totalorder %s33_s25, %s33_s25 }
   0x6   :  { %p636_p0 = scmp.ne.s32.totalorder %s33_s25, %s635_s26  ;;  %p641_p2 = scmp.lt.s32.totalorder %s635_s26, %s635_s26 }
   0x8   :  { %p642_p3 = por %p641_p2, %p640_p1 }
   0xa   :  { %p643_p4 = pnand %p642_p3, %p636_p0 }
   0xc   :  { %646 = shalt.err (!%p643_p4)
}
   0xd   :  { %s714_s27 = smov 128   ;;  %s715_s28 = smov 8  }
   0xe   :  { %38 = dma.hbm_to_vmem [thread:$0]  %s860_s1, 2048, %s33_s25, [#allocation6], %s714_s27, %s714_s27, %s715_s28  }
   0xf   :  { %s716_s8 = smov [#allocation3]  }
  0x10   :  { %s20_s9 = sshll.u32 %s716_s8, 4  ;;  %s21_s9 = int_to_ptr.vmem [resolvable:$true] %s20_s9 }
  0x11   :  { %s655_s10 = scalar_lea.vmem %s21_s9, 32  ;;  %s659_s11 = scalar_lea.vmem %s21_s9, 128 }
  0x12   :  { %p656_p5 = scmp.ne.s32.totalorder %s21_s9, %s655_s10  ;;  %p660_p6 = scmp.lt.s32.totalorder %s21_s9, %s21_s9 }
  0x13   :  { %p661_p7 = scmp.lt.s32.totalorder %s659_s11, %s655_s10 }
  0x15   :  { %p662_p8 = por %p661_p7, %p660_p6 }
  0x17   :  { %p663_p9 = pnand %p662_p8, %p656_p5 }
  0x19   :  { %666 = shalt.err (!%p663_p9)
}
  0x1a   :  { %s717_s12 = smov 32   ;;  %s718_s13 = smov 2  }
  0x1b   :  { %26 = dma.hbm_to_vmem [thread:$0]  %s859_s0, 32, %s21_s9, [#allocation4], %s717_s12, %s717_s12, %s718_s13  }
  0x1c   :  { %s719_s16 = smov [#allocation7]   ;;  %s720_s17 = smov [#allocation8]  }
  0x1d   :  { %s46_s1 = sshll.u32 %s719_s16, 4  ;;  %s60_s18 = sshll.u32 %s720_s17, 4  ;;  %s47_s1 = int_to_ptr.vmem [resolvable:$true] %s46_s1  ;;  %s61_s18 = int_to_ptr.vmem [resolvable:$true] %s60_s18 }
  0x1e   :  { %s675_s19 = scalar_lea.vmem %s47_s1, 2048  ;;  %p680_p11 = scmp.lt.s32.totalorder %s47_s1, %s47_s1 }
  0x1f   :  { %p676_p10 = scmp.ne.s32.totalorder %s47_s1, %s675_s19  ;;  %p681_p12 = scmp.lt.s32.totalorder %s675_s19, %s675_s19 }
  0x21   :  { %p682_p13 = por %p681_p12, %p680_p11 }
  0x23   :  { %p683_p0 = pnand %p682_p13, %p676_p10 }
  0x25   :  { %686 = shalt.err (!%p683_p0)
}
  0x26   :  { %52 = dma.hbm_to_vmem [thread:$0]  %s862_s3, 2048, %s47_s1, [#allocation6], %s714_s27, %s714_s27, %s715_s28  }
  0x27   :  { %s695_s0 = scalar_lea.vmem %s61_s18, 2048  ;;  %p700_p2 = scmp.lt.s32.totalorder %s61_s18, %s61_s18 }
  0x28   :  { %p696_p1 = scmp.ne.s32.totalorder %s61_s18, %s695_s0  ;;  %p701_p3 = scmp.lt.s32.totalorder %s695_s0, %s695_s0 }
  0x2a   :  { %p702_p4 = por %p701_p3, %p700_p2 }
  0x2c   :  { %p703_p5 = pnand %p702_p4, %p696_p1 }
  0x2e   :  { %706 = shalt.err (!%p703_p5)
}
  0x2f   :  { %66 = dma.hbm_to_vmem [thread:$0]  %s864_s5, 2048, %s61_s18, [#allocation9], %s714_s27, %s714_s27, %s715_s28  }
  0x30   :  { %707 = dma.done.wait [#allocation4], 128  }
  0x31   :  { %708 = vsyncadd [#allocation4], 4294967168 }
  0x32   :  { %709 = dma.done.wait [#allocation6], 4096  }
  0x33   :  { %710 = vsyncadd [#allocation6], 4294963200 }
  0x34   :  { %711 = dma.done.wait [#allocation9], 2048  }
  0x35   :  { %712 = vsyncadd [#allocation9], 4294965248  ;;  %v721_v0 = vmov 0.0   ;;  %vm722_vm0 = vmmov 0   ;;  %v101_v1 = vld [vmem:[#allocation5 + $0x78] sm:$0xff]  ;;  %v100_v2 = vld [vmem:[#allocation5 + $0x70] sm:$0xff]  ;;  %v367_v61 = vlaneseq }
  0x36   :  { %506 = vmatprep.subr.mxu0 %v721_v0  ;;  %81 = vst [vmem:[#allocation2] sm:$0xff] %v721_v0  ;;  %538 = vmatprep.mubr.msk.f32.mxu0 %vm722_vm0, %v721_v0  ;;  %v99_v3 = vld [vmem:[#allocation5 + $0x68] sm:$0xff]  ;;  %vm83_vm1 = vcmask 31744   ;;  %v98_v4 = vld [vmem:[#allocation5 + $0x60] sm:$0xff]  ;;  %v82_v5 = vld [vmem:[#allocation3] sm:$0xff] }
  0x37   :  { %541 = vmatprep.subr.mxu1 %v721_v0  ;;  %573 = vmatprep.mubr.msk.f32.mxu1 %vm722_vm0, %v721_v0  ;;  %v195_v6 = vld [vmem:[#allocation7 + $0x78] sm:$0xff]  ;;  %84 = vst.msk [vmem:[#allocation2] sm:$0xff] %vm83_vm1, %v82_v5  ;;  %v194_v8 = vld [vmem:[#allocation7 + $0x70] sm:$0xff]  ;;  %v193_v9 = vld [vmem:[#allocation7 + $0x68] sm:$0xff]  ;;  %v368_v62 = vand.u32 127, %v367_v61 }
  0x38   :  { %507 = vmatpush3.msra.mxu0 %v101_v1  ;;  %v97_v7 = vld [vmem:[#allocation5 + $0x58] sm:$0xff]  ;;  %542 = vmatpush3.msra.mxu1 %v195_v6  ;;  %v96_v10 = vld [vmem:[#allocation5 + $0x50] sm:$0xff]  ;;  %v192_v11 = vld [vmem:[#allocation7 + $0x60] sm:$0xff] }
  0x39   :  { %508 = vmatprep.subr.mxu0 %v721_v0  ;;  %543 = vmatprep.subr.mxu1 %v721_v0  ;;  %v95_v12 = vld [vmem:[#allocation5 + $0x48] sm:$0xff]  ;;  %v191_v13 = vld [vmem:[#allocation7 + $0x58] sm:$0xff]  ;;  %v94_v14 = vld [vmem:[#allocation5 + $0x40] sm:$0xff]  ;;  %vm369_vm2 = vcmp.lt.s32.totalorder %v368_v62, 2  ;;  %vm399_vm5 = vcmp.ge.s32.totalorder %v368_v62, 2  ;;  %vm400_vm6 = vcmp.lt.s32.totalorder %v368_v62, 4 }
  0x3a   :  { %509 = vmatpush3.msra.mxu0 %v100_v2  ;;  %544 = vmatpush3.msra.mxu1 %v194_v8  ;;  %v190_v15 = vld [vmem:[#allocation7 + $0x50] sm:$0xff]  ;;  %v93_v16 = vld [vmem:[#allocation5 + $0x38] sm:$0xff]  ;;  %v189_v17 = vld [vmem:[#allocation7 + $0x48] sm:$0xff]  ;;  %vm403_vm8 = vcmp.eq.s32.totalorder %v368_v62, 4  ;;  %vm405_vm9 = vcmp.eq.s32.totalorder %v368_v62, 5 }
  0x3b   :  { %510 = vmatprep.subr.mxu0 %v721_v0  ;;  %545 = vmatprep.subr.mxu1 %v721_v0  ;;  %v92_v18 = vld [vmem:[#allocation5 + $0x30] sm:$0xff]  ;;  %v188_v19 = vld [vmem:[#allocation7 + $0x40] sm:$0xff]  ;;  %v91_v20 = vld [vmem:[#allocation5 + $0x28] sm:$0xff] }
  0x3c   :  { %511 = vmatpush3.msra.mxu0 %v99_v3  ;;  %546 = vmatpush3.msra.mxu1 %v193_v9  ;;  %v187_v21 = vld [vmem:[#allocation7 + $0x38] sm:$0xff]  ;;  %v90_v22 = vld [vmem:[#allocation5 + $0x20] sm:$0xff]  ;;  %v186_v23 = vld [vmem:[#allocation7 + $0x30] sm:$0xff] }
  0x3d   :  { %512 = vmatprep.subr.mxu0 %v721_v0  ;;  %547 = vmatprep.subr.mxu1 %v721_v0  ;;  %v89_v24 = vld [vmem:[#allocation5 + $0x18] sm:$0xff]  ;;  %v185_v25 = vld [vmem:[#allocation7 + $0x28] sm:$0xff]  ;;  %v88_v26 = vld [vmem:[#allocation5 + $0x10] sm:$0xff] }
  0x3e   :  { %513 = vmatpush3.msra.mxu0 %v98_v4  ;;  %548 = vmatpush3.msra.mxu1 %v192_v11  ;;  %v184_v27 = vld [vmem:[#allocation7 + $0x20] sm:$0xff]  ;;  %v87_v28 = vld [vmem:[#allocation5 + $0x8] sm:$0xff]  ;;  %v183_v29 = vld [vmem:[#allocation7 + $0x18] sm:$0xff] }
  0x3f   :  { %514 = vmatprep.subr.mxu0 %v721_v0  ;;  %549 = vmatprep.subr.mxu1 %v721_v0  ;;  %v86_v30 = vld [vmem:[#allocation5] sm:$0xff]  ;;  %v85_v31 = vld [vmem:[#allocation2] sm:$0xff]  ;;  %v181_v33 = vld [vmem:[#allocation7 + $0x8] sm:$0xff] }
  0x40   :  { %515 = vmatpush3.msra.mxu0 %v97_v7  ;;  %550 = vmatpush3.msra.mxu1 %v191_v13  ;;  %v182_v32 = vld [vmem:[#allocation7 + $0x10] sm:$0xff]  ;;  %v180_v34 = vld [vmem:[#allocation7] sm:$0xff]  ;;  %v289_v35 = vld [vmem:[#allocation8 + $0x78] sm:$0xff] }
  0x41   :  { %516 = vmatprep.subr.mxu0 %v721_v0  ;;  %551 = vmatprep.subr.mxu1 %v721_v0  ;;  %v288_v36 = vld [vmem:[#allocation8 + $0x70] sm:$0xff]  ;;  %v287_v37 = vld [vmem:[#allocation8 + $0x68] sm:$0xff]  ;;  %v286_v38 = vld [vmem:[#allocation8 + $0x60] sm:$0xff] }
  0x42   :  { %517 = vmatpush3.msra.mxu0 %v96_v10  ;;  %552 = vmatpush3.msra.mxu1 %v190_v15  ;;  %v285_v39 = vld [vmem:[#allocation8 + $0x58] sm:$0xff]  ;;  %v284_v40 = vld [vmem:[#allocation8 + $0x50] sm:$0xff]  ;;  %v283_v41 = vld [vmem:[#allocation8 + $0x48] sm:$0xff] }
  0x43   :  { %518 = vmatprep.subr.mxu0 %v721_v0  ;;  %553 = vmatprep.subr.mxu1 %v721_v0  ;;  %v282_v42 = vld [vmem:[#allocation8 + $0x40] sm:$0xff]  ;;  %v281_v43 = vld [vmem:[#allocation8 + $0x38] sm:$0xff]  ;;  %v280_v44 = vld [vmem:[#allocation8 + $0x30] sm:$0xff] }
  0x44   :  { %519 = vmatpush3.msra.mxu0 %v95_v12  ;;  %554 = vmatpush3.msra.mxu1 %v189_v17  ;;  %v279_v45 = vld [vmem:[#allocation8 + $0x28] sm:$0xff]  ;;  %v278_v46 = vld [vmem:[#allocation8 + $0x20] sm:$0xff]  ;;  %v277_v47 = vld [vmem:[#allocation8 + $0x18] sm:$0xff] }
  0x45   :  { %520 = vmatprep.subr.mxu0 %v721_v0  ;;  %555 = vmatprep.subr.mxu1 %v721_v0  ;;  %v452_v48 = vld [vmem:[%s861_s2] ss:$0 sm:$0xff]  ;;  %v275_v54 = vld [vmem:[#allocation8 + $0x8] sm:$0xff]  ;;  %v274_v55 = vld [vmem:[#allocation8] sm:$0xff] }
  0x46   :  { %521 = vmatpush3.msra.mxu0 %v94_v14  ;;  %556 = vmatpush3.msra.mxu1 %v188_v19  ;;  %v276_v53 = vld [vmem:[#allocation8 + $0x10] sm:$0xff]  ;;  %vm401_vm7 = vmand %vm399_vm5, %vm400_vm6 }
  0x47   :  { %522 = vmatprep.subr.mxu0 %v721_v0  ;;  %557 = vmatprep.subr.mxu1 %v721_v0  ;;  %v453_v56 = vld [vmem:[%s863_s4] ss:$0 sm:$0xff] }
  0x48   :  { %523 = vmatpush3.msra.mxu0 %v93_v16  ;;  %558 = vmatpush3.msra.mxu1 %v187_v21  ;;  %v454_v63 = vld [vmem:[%s865_s6] ss:$0 sm:$0xff] }
  0x49   :  { %524 = vmatprep.subr.mxu0 %v721_v0  ;;  %559 = vmatprep.subr.mxu1 %v721_v0 }
  0x4a   :  { %525 = vmatpush3.msra.mxu0 %v92_v18  ;;  %560 = vmatpush3.msra.mxu1 %v186_v23  ;;  %v389_v18 = vcvt.s32.f32 %v368_v62 }
  0x4b   :  { %526 = vmatprep.subr.mxu0 %v721_v0  ;;  %561 = vmatprep.subr.mxu1 %v721_v0 }
  0x4c   :  { %527 = vmatpush3.msra.mxu0 %v91_v20  ;;  %562 = vmatpush3.msra.mxu1 %v185_v25 }
  0x4d   :  { %528 = vmatprep.subr.mxu0 %v721_v0  ;;  %563 = vmatprep.subr.mxu1 %v721_v0 }
  0x4e   :  { %529 = vmatpush3.msra.mxu0 %v90_v22  ;;  %564 = vmatpush3.msra.mxu1 %v184_v27 }
  0x4f   :  { %530 = vmatprep.subr.mxu0 %v721_v0  ;;  %565 = vmatprep.subr.mxu1 %v721_v0 }
  0x50   :  { %531 = vmatpush3.msra.mxu0 %v89_v24  ;;  %566 = vmatpush3.msra.mxu1 %v183_v29 }
  0x51   :  { %532 = vmatprep.subr.mxu0 %v721_v0  ;;  %567 = vmatprep.subr.mxu1 %v721_v0 }
  0x52   :  { %533 = vmatpush3.msra.mxu0 %v88_v26  ;;  %568 = vmatpush3.msra.mxu1 %v182_v32 }
  0x53   :  { %534 = vmatprep.subr.mxu0 %v721_v0  ;;  %569 = vmatprep.subr.mxu1 %v721_v0 }
  0x54   :  { %535 = vmatpush3.msra.mxu0 %v87_v28  ;;  %570 = vmatpush3.msra.mxu1 %v181_v33 }
  0x55   :  { %536 = vmatprep.subr.mxu0 %v721_v0  ;;  %571 = vmatprep.subr.mxu1 %v721_v0 }
  0x56   :  { %537 = vmatpush3.msra.mxu0 %v86_v30  ;;  %572 = vmatpush3.msra.mxu1 %v180_v34 }
  0x57   :  { %539 = vmatmul.mubr.f32.vlgmr.msra.gmra.mxu0 %v85_v31  ;;  %576 = vmatprep.subr.mxu0 %v721_v0 }
  0x58   :  { %608 = vmatprep.mubr.msk.f32.mxu0 %vm722_vm0, %v721_v0  ;;  %577 = vmatpush3.msra.mxu0 %v289_v35 }
  0x59   :  { %578 = vmatprep.subr.mxu0 %v721_v0 }
  0x5a   :  { %579 = vmatpush3.msra.mxu0 %v288_v36 }
  0x5b   :  { %580 = vmatprep.subr.mxu0 %v721_v0 }
  0x5c   :  { %581 = vmatpush3.msra.mxu0 %v287_v37 }
  0x5d   :  { %582 = vmatprep.subr.mxu0 %v721_v0 }
  0x5e   :  { %583 = vmatpush3.msra.mxu0 %v286_v38 }
  0x5f   :  { %584 = vmatprep.subr.mxu0 %v721_v0 }
  0x60   :  { %585 = vmatpush3.msra.mxu0 %v285_v39 }
  0x61   :  { %586 = vmatprep.subr.mxu0 %v721_v0 }
  0x62   :  { %587 = vmatpush3.msra.mxu0 %v284_v40 }
  0x63   :  { %588 = vmatprep.subr.mxu0 %v721_v0 }
  0x64   :  { %589 = vmatpush3.msra.mxu0 %v283_v41 }
  0x65   :  { %590 = vmatprep.subr.mxu0 %v721_v0 }
  0x66   :  { %591 = vmatpush3.msra.mxu0 %v282_v42 }
  0x67   :  { %592 = vmatprep.subr.mxu0 %v721_v0 }
  0x68   :  { %593 = vmatpush3.msra.mxu0 %v281_v43 }
  0x69   :  { %594 = vmatprep.subr.mxu0 %v721_v0 }
  0x6a   :  { %595 = vmatpush3.msra.mxu0 %v280_v44 }
  0x6b   :  { %596 = vmatprep.subr.mxu0 %v721_v0 }
  0x6c   :  { %597 = vmatpush3.msra.mxu0 %v279_v45 }
  0x6d   :  { %598 = vmatprep.subr.mxu0 %v721_v0 }
  0x6e   :  { %599 = vmatpush3.msra.mxu0 %v278_v46 }
  0x6f   :  { %600 = vmatprep.subr.mxu0 %v721_v0 }
  0x70   :  { %601 = vmatpush3.msra.mxu0 %v277_v47 }
  0x71   :  { %602 = vmatprep.subr.mxu0 %v721_v0 }
  0x72   :  { %603 = vmatpush3.msra.mxu0 %v276_v53 }
  0x73   :  { %604 = vmatprep.subr.mxu0 %v721_v0 }
  0x74   :  { %605 = vmatpush3.msra.mxu0 %v275_v54 }
  0x75   :  { %606 = vmatprep.subr.mxu0 %v721_v0 }
  0x76   :  { %607 = vmatpush3.msra.mxu0 %v274_v55 }
 0x117   :  { %v175_v49 = vpop.f32.mrf.mxu0 }
 0x118   :  { %v176_v50 = vadd.f32 %v452_v48, %v175_v49 }
 0x119   :  { %v540_v51 = vpop.f32.mrf.mxu0 }
 0x11a   :  { %v179_v52 = vmax.f32 %v176_v50, 0.0 }
 0x11c   :  { %574 = vmatmul.mubr.f32.vlgmr.msra.gmra.mxu1 %v179_v52 }
 0x1dc   :  { %v269_v57 = vpop.f32.mrf.mxu1 }
 0x1dd   :  { %v270_v58 = vadd.f32 %v453_v56, %v269_v57 }
 0x1de   :  { %v575_v59 = vpop.f32.mrf.mxu1 }
 0x1df   :  { %v273_v60 = vmax.f32 %v270_v58, 0.0 }
 0x1e1   :  { %609 = vmatmul.mubr.f32.vlgmr.msra.gmra.mxu0 %v273_v60 }
 0x2a1   :  { %v363_v1 = vpop.f32.mrf.mxu0 }
 0x2a2   :  { %v364_v0 = vadd.f32 %v454_v63, %v363_v1 }
 0x2a3   :  { %v610_v2 = vpop.f32.mrf.mxu0 }
 0x2a4   :  { %v370_v3 = vsel %vm369_vm2, %v364_v0, -inf  ;;  %v398_v22 = vsel %vm369_vm2, %v364_v0, 0.0 }
 0x2a5   :  { %371 = vmax.xlane.f32.xlu0 %v370_v3 }
 0x32e   :  { %v372_v4 = vpop.xlane.xlu0 %371 }
 0x32f   :  { %v373_v5 = vsub.f32 %v364_v0, %v372_v4  ;;  %vm390_vm3 = vcmp.eq.f32.partialorder %v370_v3, %v372_v4 }
 0x330   :  { %vm391_vm4 = vmand %vm369_vm2, %vm390_vm3 }
 0x331   :  { %v374_v6 = vmul.f32 1.442695, %v373_v5  ;;  %v392_v19 = vsel %vm391_vm4, %v389_v18, 128.0 }
 0x333   :  { %621 = vpow2.f32 %v374_v6 }
 0x340   :  { %v622_v7 = vpop.eup %621 }
 0x341   :  { %v376_v8 = vsel %vm369_vm2, %v622_v7, 0.0 }
 0x342   :  { %377 = vadd.xlane.f32.xlu0 %v376_v8 }
 0x3cb   :  { %v378_v9 = vpop.xlane.xlu0 %377 }
 0x3cc   :  { %623 = vlog2.f32 %v378_v9 }
 0x3cd   :  { %625 = vrcp.f32 %v378_v9 }
 0x3d9   :  { %v624_v10 = vpop.eup %623 }
 0x3da   :  { %v626_v11 = vpop.eup %625  ;;  %v380_v12 = vmul.f32 0.6931472, %v624_v10 }
 0x3db   :  { %v383_v14 = vmul.f32 %v626_v11, %v376_v8 }
 0x3dc   :  { %v381_v13 = vsub.f32 %v373_v5, %v380_v12 }
 0x3de   :  { %v395_v15 = vsel %vm369_vm2, %v381_v13, 0.0  ;;  %v384_v16 = vmul.f32 %v383_v14, %v381_v13 }
 0x3df   :  { %396 = vrot.lane.b32.xlu0 %v395_v15, %s718_s13 }
 0x3e0   :  { %v385_v17 = vsel %vm369_vm2, %v384_v16, 0.0 }
 0x3e1   :  { %386 = vadd.xlane.f32.xlu1 %v385_v17 }
 0x3e5   :  { %393 = vmin.xlane.f32.xlu1 %v392_v19 }
 0x451   :  { %v397_v20 = vpop.permute.xlu0 %396 }
 0x452   :  { %v402_v24 = vsel %vm401_vm7, %v397_v20, %v398_v22 }
 0x46a   :  { %v387_v21 = vpop.xlane.xlu1 %386 }
 0x46b   :  { %v388_v23 = vsub.f32 0.0, %v387_v21 }
 0x46d   :  { %v404_v25 = vsel %vm403_vm8, %v388_v23, %v402_v24 }
 0x46e   :  { %v394_v26 = vpop.xlane.xlu1 %393 }
 0x46f   :  { %v406_v27 = vsel %vm405_vm9, %v394_v26, %v404_v25 }
 0x470   :  { %407 = vst [vmem:[#allocation10] sm:$0xff] %v406_v27 }
 0x477   :  { %v426_v28 = vld [vmem:[#allocation10] sm:$0x3] }
 0x478   :  { %427 = vst [vmem:[%s866_s7] sm:$0x3] %v426_v28 }
 0x479   :  { %445 = vsyncpa [#allocation4], 1 }
 0x47a   :  { %446 = vsyncpa [#allocation6], 1 }
 0x47b   :  { %447 = vsyncpa [#allocation9], 1 }

</bundles_post_ra>
